<compile_context>
chip_gen: v5e
topology: v5e:2x2
jax: 0.10.0
libtpu: 0.0.40
codegen_flags: <defaults>
</compile_context>

<pallas_src>
import jax
import jax.numpy as jnp
from jax.experimental import pallas as pl
from jax.experimental.pallas import tpu as pltpu


def lstm_heads_kernel(len_ref, x_ref, wih_ref, whh_ref, b_ref,
                      wslot_ref, bslot_ref, wint_ref, bint_ref,
                      slots_ref, intent_ref, gx_sc):
    BP = len_ref.shape[0]            # padded batch (multiple of 8 sublanes)
    H = whh_ref.shape[0]
    T = x_ref.shape[0] // BP

    # ---- fused input projection (no sequential dependence): ONE lane-dense
    # (T*BP, E) x (E, 4H) matmul, bias folded in, staged in VMEM scratch. -----
    gx_sc[...] = (jnp.dot(x_ref[...], wih_ref[...],
                          preferred_element_type=jnp.float32)
                  + b_ref[...])                               # (T*BP, 4H)

    # Loop-invariant operands hoisted out of the recurrence.
    whh = whh_ref[...]                                        # (H, 4H)
    lens = len_ref[...]                                       # (BP, 1) int32
    zero_bh = jnp.zeros((BP, H), jnp.float32)

    h = zero_bh
    c = zero_bh
    h_masked = []                                             # stays in vregs
    for t in range(T):                                        # static unroll
        # ONE fused (BP,H)x(H,4H) recurrent matmul per step; 128-lane output.
        gates = (gx_sc[pl.ds(t * BP, BP), :]                  # static, 8-aligned
                 + jnp.dot(h, whh, preferred_element_type=jnp.float32))
        sg = jax.nn.sigmoid(gates)                            # 1 EUP push
        th = jnp.tanh(gates)                                  # 1 EUP push
        i_t = sg[:, 0 * H:1 * H]                              # PyTorch order
        f_t = sg[:, 1 * H:2 * H]                              # i, f, g, o
        g_t = th[:, 2 * H:3 * H]
        o_t = sg[:, 3 * H:4 * H]
        c_new = f_t * c + i_t * g_t
        h_new = o_t * jnp.tanh(c_new)
        # pack/pad semantics: freeze h/c past seq_lengths[b]; padded encoder
        # outputs are zero (pad_packed_sequence pads with 0).
        valid = t < lens                                      # (BP, 1) bool
        h_masked.append(jnp.where(valid, h_new, zero_bh))
        h = jnp.where(valid, h_new, h)
        c = jnp.where(valid, c_new, c)

    # ---- heads: single batched, lane-dense (padded to 128) matmuls. --------
    h_seq = jnp.concatenate(h_masked, axis=0)                 # (T*BP, H)
    slots_ref[...] = (jnp.dot(h_seq, wslot_ref[...],
                              preferred_element_type=jnp.float32)
                      + bslot_ref[...])
    intent_ref[...] = (jnp.dot(h, wint_ref[...],
                               preferred_element_type=jnp.float32)
                       + bint_ref[...])


def _round_up(n, m):
    return ((n + m - 1) // m) * m


def model_ias_forward(utterance, seq_lengths, params):
    """Returns (slots (B, out_slot, T), intent (B, out_int)) — eval mode."""
    B, T = utterance.shape
    E = params["emb"].shape[1]
    H = params["w_hh"].shape[1]
    n_slot = params["w_slot"].shape[0]
    n_int = params["w_int"].shape[0]
    BP = _round_up(max(B, 8), 8)       # sublane-aligned batch
    SP = _round_up(n_slot, 128)        # lane-dense padded head widths
    IP = _round_up(n_int, 128)

    # Embedding gather + permute(1,0,2) + batch pad + flatten (XLA glue).
    emb = params["emb"][utterance]                            # (B, T, E)
    x_tbe = jnp.transpose(emb, (1, 0, 2))                     # (T, B, E)
    x_tbe = jnp.pad(x_tbe, ((0, 0), (0, BP - B), (0, 0)))     # (T, BP, E)
    x_flat = x_tbe.reshape(T * BP, E)                         # row = t*BP + b

    lens2d = jnp.zeros((BP, 1), jnp.int32).at[:B, 0].set(
        seq_lengths.astype(jnp.int32))                        # padded rows: len 0

    # Fused-gate weights (PyTorch gate order i, f, g, o along the 4H axis).
    wih_t = params["w_ih"].T.astype(jnp.float32)              # (E, 4H)
    whh_t = params["w_hh"].T.astype(jnp.float32)              # (H, 4H)
    b2 = (params["b_ih"] + params["b_hh"]).reshape(1, 4 * H)  # (1, 4H)

    # Lane-padded head weights so the in-kernel stores are unmasked.
    wslot_p = jnp.zeros((H, SP), jnp.float32).at[:, :n_slot].set(params["w_slot"].T)
    bslot_p = jnp.zeros((1, SP), jnp.float32).at[:, :n_slot].set(params["b_slot"])
    wint_p = jnp.zeros((H, IP), jnp.float32).at[:, :n_int].set(params["w_int"].T)
    bint_p = jnp.zeros((1, IP), jnp.float32).at[:, :n_int].set(params["b_int"])

    slots_flat, intent_p = pl.pallas_call(
        lstm_heads_kernel,
        out_shape=(
            jax.ShapeDtypeStruct((T * BP, SP), jnp.float32),
            jax.ShapeDtypeStruct((BP, IP), jnp.float32),
        ),
        scratch_shapes=[
            pltpu.VMEM((T * BP, 4 * H), jnp.float32),   # fused input projections
        ],
        compiler_params=pltpu.CompilerParams(
            # safe on v5e/v6e/v7x at these shapes; re-budget (T-chunk the input
            # projection) for realistic sizes on v7x's 64 MiB VMEM.
            vmem_limit_bytes=32 * 1024 * 1024,
        ),
    )(lens2d, x_flat, wih_t, whh_t, b2, wslot_p, bslot_p, wint_p, bint_p)

    slots = slots_flat.reshape(T, BP, SP)[:, :B, :n_slot]     # (T, B, S)
    slots = jnp.transpose(slots, (1, 2, 0))                   # (B, S, T) == permute(1,2,0)
    intent = intent_p[:B, :n_int]
    return slots, intent


def init_params(key, vocab_len, emb_size, hid_size, out_slot, out_int, pad_index=0):
    ks = jax.random.split(key, 8)
    scale = 0.1
    emb = scale * jax.random.normal(ks[0], (vocab_len, emb_size), jnp.float32)
    emb = emb.at[pad_index].set(0.0)                          # padding_idx row is zero
    return {
        "emb": emb,
        "w_ih": scale * jax.random.normal(ks[1], (4 * hid_size, emb_size), jnp.float32),
        "w_hh": scale * jax.random.normal(ks[2], (4 * hid_size, hid_size), jnp.float32),
        "b_ih": scale * jax.random.normal(ks[3], (4 * hid_size,), jnp.float32),
        "b_hh": scale * jax.random.normal(ks[4], (4 * hid_size,), jnp.float32),
        "w_slot": scale * jax.random.normal(ks[5], (out_slot, hid_size), jnp.float32),
        "b_slot": scale * jax.random.normal(ks[6], (out_slot,), jnp.float32),
        "w_int": scale * jax.random.normal(ks[7], (out_int, hid_size), jnp.float32),
        "b_int": jnp.zeros((out_int,), jnp.float32),
    }


def reference_forward(utterance, seq_lengths, params):
    """Pure-JAX reference reproducing the PyTorch forward (eval mode)."""
    B, T = utterance.shape
    H = params["w_hh"].shape[1]
    emb = params["emb"][utterance]                            # (B, T, E)
    x = jnp.transpose(emb, (1, 0, 2))                         # (T, B, E)
    wih_t = params["w_ih"].T                                  # (E, 4H)
    whh_t = params["w_hh"].T                                  # (H, 4H)
    b = params["b_ih"] + params["b_hh"]

    def step(carry, inp):
        h, c = carry
        x_t, t = inp
        gates = x_t @ wih_t + h @ whh_t + b
        i_g = jax.nn.sigmoid(gates[:, 0 * H:1 * H])
        f_g = jax.nn.sigmoid(gates[:, 1 * H:2 * H])
        g_g = jnp.tanh(gates[:, 2 * H:3 * H])
        o_g = jax.nn.sigmoid(gates[:, 3 * H:4 * H])
        c_new = f_g * c + i_g * g_g
        h_new = o_g * jnp.tanh(c_new)
        m = (t < seq_lengths).astype(jnp.float32)[:, None]
        return (m * h_new + (1 - m) * h, m * c_new + (1 - m) * c), m * h_new

    (h_last, _), outs = jax.lax.scan(
        step, (jnp.zeros((B, H)), jnp.zeros((B, H))), (x, jnp.arange(T)))
    slots = outs @ params["w_slot"].T + params["b_slot"]       # (T, B, S)
    intent = h_last @ params["w_int"].T + params["b_int"]      # (B, I)
    return jnp.transpose(slots, (1, 2, 0)), intent


if __name__ == "__main__":
    # small shapes: batch=4, seq=8, emb=32, hidden=32, vocab=50, slots=16, intents=8
    B, T, E, H = 4, 8, 32, 32
    VOCAB, OUT_SLOT, OUT_INT, PAD = 50, 16, 8, 0

    key = jax.random.PRNGKey(0)
    k_par, k_tok = jax.random.split(key)
    params = init_params(k_par, VOCAB, E, H, OUT_SLOT, OUT_INT, PAD)

    # lengths sorted descending (pack_padded_sequence enforce_sorted=True),
    # max length == T; padded positions hold the pad token.
    seq_lengths = jnp.array([8, 6, 5, 3], dtype=jnp.int32)
    tokens = jax.random.randint(k_tok, (B, T), 1, VOCAB, dtype=jnp.int32)
    t_idx = jnp.arange(T)[None, :]
    utterance = jnp.where(t_idx < seq_lengths[:, None], tokens, PAD)

    slots, intent = model_ias_forward(utterance, seq_lengths, params)
    slots, intent = jax.block_until_ready((slots, intent))

    slots_ref, intent_ref = reference_forward(utterance, seq_lengths, params)
    assert slots.shape == (B, OUT_SLOT, T) and intent.shape == (B, OUT_INT)
    assert jnp.allclose(slots, slots_ref, atol=1e-4, rtol=1e-4)
    assert jnp.allclose(intent, intent_ref, atol=1e-4, rtol=1e-4)

    print("KERNEL_OK")
</pallas_src>

<mosaic_0001>
module attributes {stable_mosaic.version = 11 : i64} {
  func.func @lstm_heads_kernel(%arg0: memref<8x1xi32, #tpu.memory_space<vmem>>, %arg1: memref<64x32xf32, #tpu.memory_space<vmem>>, %arg2: memref<32x128xf32, #tpu.memory_space<vmem>>, %arg3: memref<32x128xf32, #tpu.memory_space<vmem>>, %arg4: memref<1x128xf32, #tpu.memory_space<vmem>>, %arg5: memref<32x128xf32, #tpu.memory_space<vmem>>, %arg6: memref<1x128xf32, #tpu.memory_space<vmem>>, %arg7: memref<32x128xf32, #tpu.memory_space<vmem>>, %arg8: memref<1x128xf32, #tpu.memory_space<vmem>>, %arg9: memref<64x128xf32, #tpu.memory_space<vmem>>, %arg10: memref<8x128xf32, #tpu.memory_space<vmem>>, %arg11: memref<64x128xf32, #tpu.memory_space<vmem>>) attributes {dimension_semantics = [], scalar_prefetch = 0 : i64, scratch_operands = 1 : i64, tpu.core_type = #tpu.core_type<tc>} {
    %c0 = arith.constant 0 : index
    %c0_0 = arith.constant 0 : index
    %0 = vector.load %arg1[%c0, %c0_0] : memref<64x32xf32, #tpu.memory_space<vmem>>, vector<64x32xf32>
    %c0_1 = arith.constant 0 : index
    %c0_2 = arith.constant 0 : index
    %1 = vector.load %arg2[%c0_1, %c0_2] : memref<32x128xf32, #tpu.memory_space<vmem>>, vector<32x128xf32>
    %cst = arith.constant dense<0.000000e+00> : vector<64x128xf32>
    %2 = tpu.matmul %0, %1, %cst {dimension_numbers = #tpu.dot_dimension_numbers<[1], [0], [0], [1], [0, 0, 1, 1], [], []>} : vector<64x32xf32>, vector<32x128xf32>, vector<64x128xf32> -> vector<64x128xf32>
    %c0_3 = arith.constant 0 : index
    %c0_4 = arith.constant 0 : index
    %3 = vector.load %arg4[%c0_3, %c0_4] : memref<1x128xf32, #tpu.memory_space<vmem>>, vector<1x128xf32>
    %4 = vector.broadcast %3 : vector<1x128xf32> to vector<64x128xf32>
    %5 = arith.addf %2, %4 : vector<64x128xf32>
    %c0_5 = arith.constant 0 : index
    %c0_6 = arith.constant 0 : index
    %6 = vector.load %arg11[%c0_5, %c0_6] : memref<64x128xf32, #tpu.memory_space<vmem>>, vector<64x128xf32>
    tpu.vector_store %arg11[%c0_5, %c0_6], %5 {strides = array<i32>} : memref<64x128xf32, #tpu.memory_space<vmem>>, vector<64x128xf32>,
    %c0_7 = arith.constant 0 : index
    %c0_8 = arith.constant 0 : index
    %7 = vector.load %arg3[%c0_7, %c0_8] : memref<32x128xf32, #tpu.memory_space<vmem>>, vector<32x128xf32>
    %c0_9 = arith.constant 0 : index
    %c0_10 = arith.constant 0 : index
    %8 = vector.load %arg0[%c0_9, %c0_10] : memref<8x1xi32, #tpu.memory_space<vmem>>, vector<8x1xi32>
    %cst_11 = arith.constant 0.000000e+00 : f32
    %9 = vector.broadcast %cst_11 : f32 to vector<8x32xf32>
    %c0_12 = arith.constant 0 : index
    %c0_13 = arith.constant 0 : index
    %10 = vector.load %arg11[%c0_12, %c0_13] : memref<64x128xf32, #tpu.memory_space<vmem>>, vector<8x128xf32>
    %cst_14 = arith.constant dense<0.000000e+00> : vector<8x128xf32>
    %11 = tpu.matmul %9, %7, %cst_14 {dimension_numbers = #tpu.dot_dimension_numbers<[1], [0], [0], [1], [0, 0, 1, 1], [], []>} : vector<8x32xf32>, vector<32x128xf32>, vector<8x128xf32> -> vector<8x128xf32>
    %12 = arith.addf %10, %11 : vector<8x128xf32>
    %13 = arith.negf %12 : vector<8x128xf32>
    %14 = math.exp %13 : vector<8x128xf32>
    %cst_15 = arith.constant 1.000000e+00 : f32
    %15 = vector.broadcast %cst_15 : f32 to vector<8x128xf32>
    %16 = arith.addf %15, %14 : vector<8x128xf32>
    %17 = arith.divf %15, %16 : vector<8x128xf32>
    %18 = math.tanh %12 : vector<8x128xf32>
    %19 = vector.extract_strided_slice %17 {offsets = [0, 0], sizes = [8, 32], strides = [1, 1]} : vector<8x128xf32> to vector<8x32xf32>
    %20 = vector.extract_strided_slice %17 {offsets = [0, 32], sizes = [8, 32], strides = [1, 1]} : vector<8x128xf32> to vector<8x32xf32>
    %21 = vector.extract_strided_slice %18 {offsets = [0, 64], sizes = [8, 32], strides = [1, 1]} : vector<8x128xf32> to vector<8x32xf32>
    %22 = vector.extract_strided_slice %17 {offsets = [0, 96], sizes = [8, 32], strides = [1, 1]} : vector<8x128xf32> to vector<8x32xf32>
    %23 = arith.mulf %20, %9 : vector<8x32xf32>
    %24 = arith.mulf %19, %21 : vector<8x32xf32>
    %25 = arith.addf %23, %24 : vector<8x32xf32>
    %26 = math.tanh %25 : vector<8x32xf32>
    %27 = arith.mulf %22, %26 : vector<8x32xf32>
    %c0_i32 = arith.constant 0 : i32
    %28 = vector.broadcast %c0_i32 : i32 to vector<8x1xi32>
    %29 = arith.cmpi sgt, %8, %28 : vector<8x1xi32>
    %30 = vector.shape_cast %29 : vector<8x1xi1> to vector<8x1xi1>
    %31 = vector.broadcast %30 : vector<8x1xi1> to vector<8x32xi1>
    %32 = arith.select %31, %27, %9 : vector<8x32xi1>, vector<8x32xf32>
    %33 = vector.shape_cast %29 : vector<8x1xi1> to vector<8x1xi1>
    %34 = vector.broadcast %33 : vector<8x1xi1> to vector<8x32xi1>
    %35 = arith.select %34, %27, %9 : vector<8x32xi1>, vector<8x32xf32>
    %36 = vector.shape_cast %29 : vector<8x1xi1> to vector<8x1xi1>
    %37 = vector.broadcast %36 : vector<8x1xi1> to vector<8x32xi1>
    %38 = arith.select %37, %25, %9 : vector<8x32xi1>, vector<8x32xf32>
    %c8 = arith.constant 8 : index
    %c0_16 = arith.constant 0 : index
    %39 = vector.load %arg11[%c8, %c0_16] : memref<64x128xf32, #tpu.memory_space<vmem>>, vector<8x128xf32>
    %cst_17 = arith.constant dense<0.000000e+00> : vector<8x128xf32>
    %40 = tpu.matmul %35, %7, %cst_17 {dimension_numbers = #tpu.dot_dimension_numbers<[1], [0], [0], [1], [0, 0, 1, 1], [], []>} : vector<8x32xf32>, vector<32x128xf32>, vector<8x128xf32> -> vector<8x128xf32>
    %41 = arith.addf %39, %40 : vector<8x128xf32>
    %42 = arith.negf %41 : vector<8x128xf32>
    %43 = math.exp %42 : vector<8x128xf32>
    %cst_18 = arith.constant 1.000000e+00 : f32
    %44 = vector.broadcast %cst_18 : f32 to vector<8x128xf32>
    %45 = arith.addf %44, %43 : vector<8x128xf32>
    %46 = arith.divf %44, %45 : vector<8x128xf32>
    %47 = math.tanh %41 : vector<8x128xf32>
    %48 = vector.extract_strided_slice %46 {offsets = [0, 0], sizes = [8, 32], strides = [1, 1]} : vector<8x128xf32> to vector<8x32xf32>
    %49 = vector.extract_strided_slice %46 {offsets = [0, 32], sizes = [8, 32], strides = [1, 1]} : vector<8x128xf32> to vector<8x32xf32>
    %50 = vector.extract_strided_slice %47 {offsets = [0, 64], sizes = [8, 32], strides = [1, 1]} : vector<8x128xf32> to vector<8x32xf32>
    %51 = vector.extract_strided_slice %46 {offsets = [0, 96], sizes = [8, 32], strides = [1, 1]} : vector<8x128xf32> to vector<8x32xf32>
    %52 = arith.mulf %49, %38 : vector<8x32xf32>
    %53 = arith.mulf %48, %50 : vector<8x32xf32>
    %54 = arith.addf %52, %53 : vector<8x32xf32>
    %55 = math.tanh %54 : vector<8x32xf32>
    %56 = arith.mulf %51, %55 : vector<8x32xf32>
    %c1_i32 = arith.constant 1 : i32
    %57 = vector.broadcast %c1_i32 : i32 to vector<8x1xi32>
    %58 = arith.cmpi sgt, %8, %57 : vector<8x1xi32>
    %59 = vector.shape_cast %58 : vector<8x1xi1> to vector<8x1xi1>
    %60 = vector.broadcast %59 : vector<8x1xi1> to vector<8x32xi1>
    %61 = arith.select %60, %56, %9 : vector<8x32xi1>, vector<8x32xf32>
    %62 = vector.shape_cast %58 : vector<8x1xi1> to vector<8x1xi1>
    %63 = vector.broadcast %62 : vector<8x1xi1> to vector<8x32xi1>
    %64 = arith.select %63, %56, %35 : vector<8x32xi1>, vector<8x32xf32>
    %65 = vector.shape_cast %58 : vector<8x1xi1> to vector<8x1xi1>
    %66 = vector.broadcast %65 : vector<8x1xi1> to vector<8x32xi1>
    %67 = arith.select %66, %54, %38 : vector<8x32xi1>, vector<8x32xf32>
    %c16 = arith.constant 16 : index
    %c0_19 = arith.constant 0 : index
    %68 = vector.load %arg11[%c16, %c0_19] : memref<64x128xf32, #tpu.memory_space<vmem>>, vector<8x128xf32>
    %cst_20 = arith.constant dense<0.000000e+00> : vector<8x128xf32>
    %69 = tpu.matmul %64, %7, %cst_20 {dimension_numbers = #tpu.dot_dimension_numbers<[1], [0], [0], [1], [0, 0, 1, 1], [], []>} : vector<8x32xf32>, vector<32x128xf32>, vector<8x128xf32> -> vector<8x128xf32>
    %70 = arith.addf %68, %69 : vector<8x128xf32>
    %71 = arith.negf %70 : vector<8x128xf32>
    %72 = math.exp %71 : vector<8x128xf32>
    %cst_21 = arith.constant 1.000000e+00 : f32
    %73 = vector.broadcast %cst_21 : f32 to vector<8x128xf32>
    %74 = arith.addf %73, %72 : vector<8x128xf32>
    %75 = arith.divf %73, %74 : vector<8x128xf32>
    %76 = math.tanh %70 : vector<8x128xf32>
    %77 = vector.extract_strided_slice %75 {offsets = [0, 0], sizes = [8, 32], strides = [1, 1]} : vector<8x128xf32> to vector<8x32xf32>
    %78 = vector.extract_strided_slice %75 {offsets = [0, 32], sizes = [8, 32], strides = [1, 1]} : vector<8x128xf32> to vector<8x32xf32>
    %79 = vector.extract_strided_slice %76 {offsets = [0, 64], sizes = [8, 32], strides = [1, 1]} : vector<8x128xf32> to vector<8x32xf32>
    %80 = vector.extract_strided_slice %75 {offsets = [0, 96], sizes = [8, 32], strides = [1, 1]} : vector<8x128xf32> to vector<8x32xf32>
    %81 = arith.mulf %78, %67 : vector<8x32xf32>
    %82 = arith.mulf %77, %79 : vector<8x32xf32>
    %83 = arith.addf %81, %82 : vector<8x32xf32>
    %84 = math.tanh %83 : vector<8x32xf32>
    %85 = arith.mulf %80, %84 : vector<8x32xf32>
    %c2_i32 = arith.constant 2 : i32
    %86 = vector.broadcast %c2_i32 : i32 to vector<8x1xi32>
    %87 = arith.cmpi sgt, %8, %86 : vector<8x1xi32>
    %88 = vector.shape_cast %87 : vector<8x1xi1> to vector<8x1xi1>
    %89 = vector.broadcast %88 : vector<8x1xi1> to vector<8x32xi1>
    %90 = arith.select %89, %85, %9 : vector<8x32xi1>, vector<8x32xf32>
    %91 = vector.shape_cast %87 : vector<8x1xi1> to vector<8x1xi1>
    %92 = vector.broadcast %91 : vector<8x1xi1> to vector<8x32xi1>
    %93 = arith.select %92, %85, %64 : vector<8x32xi1>, vector<8x32xf32>
    %94 = vector.shape_cast %87 : vector<8x1xi1> to vector<8x1xi1>
    %95 = vector.broadcast %94 : vector<8x1xi1> to vector<8x32xi1>
    %96 = arith.select %95, %83, %67 : vector<8x32xi1>, vector<8x32xf32>
    %c24 = arith.constant 24 : index
    %c0_22 = arith.constant 0 : index
    %97 = vector.load %arg11[%c24, %c0_22] : memref<64x128xf32, #tpu.memory_space<vmem>>, vector<8x128xf32>
    %cst_23 = arith.constant dense<0.000000e+00> : vector<8x128xf32>
    %98 = tpu.matmul %93, %7, %cst_23 {dimension_numbers = #tpu.dot_dimension_numbers<[1], [0], [0], [1], [0, 0, 1, 1], [], []>} : vector<8x32xf32>, vector<32x128xf32>, vector<8x128xf32> -> vector<8x128xf32>
    %99 = arith.addf %97, %98 : vector<8x128xf32>
    %100 = arith.negf %99 : vector<8x128xf32>
    %101 = math.exp %100 : vector<8x128xf32>
    %cst_24 = arith.constant 1.000000e+00 : f32
    %102 = vector.broadcast %cst_24 : f32 to vector<8x128xf32>
    %103 = arith.addf %102, %101 : vector<8x128xf32>
    %104 = arith.divf %102, %103 : vector<8x128xf32>
    %105 = math.tanh %99 : vector<8x128xf32>
    %106 = vector.extract_strided_slice %104 {offsets = [0, 0], sizes = [8, 32], strides = [1, 1]} : vector<8x128xf32> to vector<8x32xf32>
    %107 = vector.extract_strided_slice %104 {offsets = [0, 32], sizes = [8, 32], strides = [1, 1]} : vector<8x128xf32> to vector<8x32xf32>
    %108 = vector.extract_strided_slice %105 {offsets = [0, 64], sizes = [8, 32], strides = [1, 1]} : vector<8x128xf32> to vector<8x32xf32>
    %109 = vector.extract_strided_slice %104 {offsets = [0, 96], sizes = [8, 32], strides = [1, 1]} : vector<8x128xf32> to vector<8x32xf32>
    %110 = arith.mulf %107, %96 : vector<8x32xf32>
    %111 = arith.mulf %106, %108 : vector<8x32xf32>
    %112 = arith.addf %110, %111 : vector<8x32xf32>
    %113 = math.tanh %112 : vector<8x32xf32>
    %114 = arith.mulf %109, %113 : vector<8x32xf32>
    %c3_i32 = arith.constant 3 : i32
    %115 = vector.broadcast %c3_i32 : i32 to vector<8x1xi32>
    %116 = arith.cmpi sgt, %8, %115 : vector<8x1xi32>
    %117 = vector.shape_cast %116 : vector<8x1xi1> to vector<8x1xi1>
    %118 = vector.broadcast %117 : vector<8x1xi1> to vector<8x32xi1>
    %119 = arith.select %118, %114, %9 : vector<8x32xi1>, vector<8x32xf32>
    %120 = vector.shape_cast %116 : vector<8x1xi1> to vector<8x1xi1>
    %121 = vector.broadcast %120 : vector<8x1xi1> to vector<8x32xi1>
    %122 = arith.select %121, %114, %93 : vector<8x32xi1>, vector<8x32xf32>
    %123 = vector.shape_cast %116 : vector<8x1xi1> to vector<8x1xi1>
    %124 = vector.broadcast %123 : vector<8x1xi1> to vector<8x32xi1>
    %125 = arith.select %124, %112, %96 : vector<8x32xi1>, vector<8x32xf32>
    %c32 = arith.constant 32 : index
    %c0_25 = arith.constant 0 : index
    %126 = vector.load %arg11[%c32, %c0_25] : memref<64x128xf32, #tpu.memory_space<vmem>>, vector<8x128xf32>
    %cst_26 = arith.constant dense<0.000000e+00> : vector<8x128xf32>
    %127 = tpu.matmul %122, %7, %cst_26 {dimension_numbers = #tpu.dot_dimension_numbers<[1], [0], [0], [1], [0, 0, 1, 1], [], []>} : vector<8x32xf32>, vector<32x128xf32>, vector<8x128xf32> -> vector<8x128xf32>
    %128 = arith.addf %126, %127 : vector<8x128xf32>
    %129 = arith.negf %128 : vector<8x128xf32>
    %130 = math.exp %129 : vector<8x128xf32>
    %cst_27 = arith.constant 1.000000e+00 : f32
    %131 = vector.broadcast %cst_27 : f32 to vector<8x128xf32>
    %132 = arith.addf %131, %130 : vector<8x128xf32>
    %133 = arith.divf %131, %132 : vector<8x128xf32>
    %134 = math.tanh %128 : vector<8x128xf32>
    %135 = vector.extract_strided_slice %133 {offsets = [0, 0], sizes = [8, 32], strides = [1, 1]} : vector<8x128xf32> to vector<8x32xf32>
    %136 = vector.extract_strided_slice %133 {offsets = [0, 32], sizes = [8, 32], strides = [1, 1]} : vector<8x128xf32> to vector<8x32xf32>
    %137 = vector.extract_strided_slice %134 {offsets = [0, 64], sizes = [8, 32], strides = [1, 1]} : vector<8x128xf32> to vector<8x32xf32>
    %138 = vector.extract_strided_slice %133 {offsets = [0, 96], sizes = [8, 32], strides = [1, 1]} : vector<8x128xf32> to vector<8x32xf32>
    %139 = arith.mulf %136, %125 : vector<8x32xf32>
    %140 = arith.mulf %135, %137 : vector<8x32xf32>
    %141 = arith.addf %139, %140 : vector<8x32xf32>
    %142 = math.tanh %141 : vector<8x32xf32>
    %143 = arith.mulf %138, %142 : vector<8x32xf32>
    %c4_i32 = arith.constant 4 : i32
    %144 = vector.broadcast %c4_i32 : i32 to vector<8x1xi32>
    %145 = arith.cmpi sgt, %8, %144 : vector<8x1xi32>
    %146 = vector.shape_cast %145 : vector<8x1xi1> to vector<8x1xi1>
    %147 = vector.broadcast %146 : vector<8x1xi1> to vector<8x32xi1>
    %148 = arith.select %147, %143, %9 : vector<8x32xi1>, vector<8x32xf32>
    %149 = vector.shape_cast %145 : vector<8x1xi1> to vector<8x1xi1>
    %150 = vector.broadcast %149 : vector<8x1xi1> to vector<8x32xi1>
    %151 = arith.select %150, %143, %122 : vector<8x32xi1>, vector<8x32xf32>
    %152 = vector.shape_cast %145 : vector<8x1xi1> to vector<8x1xi1>
    %153 = vector.broadcast %152 : vector<8x1xi1> to vector<8x32xi1>
    %154 = arith.select %153, %141, %125 : vector<8x32xi1>, vector<8x32xf32>
    %c40 = arith.constant 40 : index
    %c0_28 = arith.constant 0 : index
    %155 = vector.load %arg11[%c40, %c0_28] : memref<64x128xf32, #tpu.memory_space<vmem>>, vector<8x128xf32>
    %cst_29 = arith.constant dense<0.000000e+00> : vector<8x128xf32>
    %156 = tpu.matmul %151, %7, %cst_29 {dimension_numbers = #tpu.dot_dimension_numbers<[1], [0], [0], [1], [0, 0, 1, 1], [], []>} : vector<8x32xf32>, vector<32x128xf32>, vector<8x128xf32> -> vector<8x128xf32>
    %157 = arith.addf %155, %156 : vector<8x128xf32>
    %158 = arith.negf %157 : vector<8x128xf32>
    %159 = math.exp %158 : vector<8x128xf32>
    %cst_30 = arith.constant 1.000000e+00 : f32
    %160 = vector.broadcast %cst_30 : f32 to vector<8x128xf32>
    %161 = arith.addf %160, %159 : vector<8x128xf32>
    %162 = arith.divf %160, %161 : vector<8x128xf32>
    %163 = math.tanh %157 : vector<8x128xf32>
    %164 = vector.extract_strided_slice %162 {offsets = [0, 0], sizes = [8, 32], strides = [1, 1]} : vector<8x128xf32> to vector<8x32xf32>
    %165 = vector.extract_strided_slice %162 {offsets = [0, 32], sizes = [8, 32], strides = [1, 1]} : vector<8x128xf32> to vector<8x32xf32>
    %166 = vector.extract_strided_slice %163 {offsets = [0, 64], sizes = [8, 32], strides = [1, 1]} : vector<8x128xf32> to vector<8x32xf32>
    %167 = vector.extract_strided_slice %162 {offsets = [0, 96], sizes = [8, 32], strides = [1, 1]} : vector<8x128xf32> to vector<8x32xf32>
    %168 = arith.mulf %165, %154 : vector<8x32xf32>
    %169 = arith.mulf %164, %166 : vector<8x32xf32>
    %170 = arith.addf %168, %169 : vector<8x32xf32>
    %171 = math.tanh %170 : vector<8x32xf32>
    %172 = arith.mulf %167, %171 : vector<8x32xf32>
    %c5_i32 = arith.constant 5 : i32
    %173 = vector.broadcast %c5_i32 : i32 to vector<8x1xi32>
    %174 = arith.cmpi sgt, %8, %173 : vector<8x1xi32>
    %175 = vector.shape_cast %174 : vector<8x1xi1> to vector<8x1xi1>
    %176 = vector.broadcast %175 : vector<8x1xi1> to vector<8x32xi1>
    %177 = arith.select %176, %172, %9 : vector<8x32xi1>, vector<8x32xf32>
    %178 = vector.shape_cast %174 : vector<8x1xi1> to vector<8x1xi1>
    %179 = vector.broadcast %178 : vector<8x1xi1> to vector<8x32xi1>
    %180 = arith.select %179, %172, %151 : vector<8x32xi1>, vector<8x32xf32>
    %181 = vector.shape_cast %174 : vector<8x1xi1> to vector<8x1xi1>
    %182 = vector.broadcast %181 : vector<8x1xi1> to vector<8x32xi1>
    %183 = arith.select %182, %170, %154 : vector<8x32xi1>, vector<8x32xf32>
    %c48 = arith.constant 48 : index
    %c0_31 = arith.constant 0 : index
    %184 = vector.load %arg11[%c48, %c0_31] : memref<64x128xf32, #tpu.memory_space<vmem>>, vector<8x128xf32>
    %cst_32 = arith.constant dense<0.000000e+00> : vector<8x128xf32>
    %185 = tpu.matmul %180, %7, %cst_32 {dimension_numbers = #tpu.dot_dimension_numbers<[1], [0], [0], [1], [0, 0, 1, 1], [], []>} : vector<8x32xf32>, vector<32x128xf32>, vector<8x128xf32> -> vector<8x128xf32>
    %186 = arith.addf %184, %185 : vector<8x128xf32>
    %187 = arith.negf %186 : vector<8x128xf32>
    %188 = math.exp %187 : vector<8x128xf32>
    %cst_33 = arith.constant 1.000000e+00 : f32
    %189 = vector.broadcast %cst_33 : f32 to vector<8x128xf32>
    %190 = arith.addf %189, %188 : vector<8x128xf32>
    %191 = arith.divf %189, %190 : vector<8x128xf32>
    %192 = math.tanh %186 : vector<8x128xf32>
    %193 = vector.extract_strided_slice %191 {offsets = [0, 0], sizes = [8, 32], strides = [1, 1]} : vector<8x128xf32> to vector<8x32xf32>
    %194 = vector.extract_strided_slice %191 {offsets = [0, 32], sizes = [8, 32], strides = [1, 1]} : vector<8x128xf32> to vector<8x32xf32>
    %195 = vector.extract_strided_slice %192 {offsets = [0, 64], sizes = [8, 32], strides = [1, 1]} : vector<8x128xf32> to vector<8x32xf32>
    %196 = vector.extract_strided_slice %191 {offsets = [0, 96], sizes = [8, 32], strides = [1, 1]} : vector<8x128xf32> to vector<8x32xf32>
    %197 = arith.mulf %194, %183 : vector<8x32xf32>
    %198 = arith.mulf %193, %195 : vector<8x32xf32>
    %199 = arith.addf %197, %198 : vector<8x32xf32>
    %200 = math.tanh %199 : vector<8x32xf32>
    %201 = arith.mulf %196, %200 : vector<8x32xf32>
    %c6_i32 = arith.constant 6 : i32
    %202 = vector.broadcast %c6_i32 : i32 to vector<8x1xi32>
    %203 = arith.cmpi sgt, %8, %202 : vector<8x1xi32>
    %204 = vector.shape_cast %203 : vector<8x1xi1> to vector<8x1xi1>
    %205 = vector.broadcast %204 : vector<8x1xi1> to vector<8x32xi1>
    %206 = arith.select %205, %201, %9 : vector<8x32xi1>, vector<8x32xf32>
    %207 = vector.shape_cast %203 : vector<8x1xi1> to vector<8x1xi1>
    %208 = vector.broadcast %207 : vector<8x1xi1> to vector<8x32xi1>
    %209 = arith.select %208, %201, %180 : vector<8x32xi1>, vector<8x32xf32>
    %210 = vector.shape_cast %203 : vector<8x1xi1> to vector<8x1xi1>
    %211 = vector.broadcast %210 : vector<8x1xi1> to vector<8x32xi1>
    %212 = arith.select %211, %199, %183 : vector<8x32xi1>, vector<8x32xf32>
    %c56 = arith.constant 56 : index
    %c0_34 = arith.constant 0 : index
    %213 = vector.load %arg11[%c56, %c0_34] : memref<64x128xf32, #tpu.memory_space<vmem>>, vector<8x128xf32>
    %cst_35 = arith.constant dense<0.000000e+00> : vector<8x128xf32>
    %214 = tpu.matmul %209, %7, %cst_35 {dimension_numbers = #tpu.dot_dimension_numbers<[1], [0], [0], [1], [0, 0, 1, 1], [], []>} : vector<8x32xf32>, vector<32x128xf32>, vector<8x128xf32> -> vector<8x128xf32>
    %215 = arith.addf %213, %214 : vector<8x128xf32>
    %216 = arith.negf %215 : vector<8x128xf32>
    %217 = math.exp %216 : vector<8x128xf32>
    %cst_36 = arith.constant 1.000000e+00 : f32
    %218 = vector.broadcast %cst_36 : f32 to vector<8x128xf32>
    %219 = arith.addf %218, %217 : vector<8x128xf32>
    %220 = arith.divf %218, %219 : vector<8x128xf32>
    %221 = math.tanh %215 : vector<8x128xf32>
    %222 = vector.extract_strided_slice %220 {offsets = [0, 0], sizes = [8, 32], strides = [1, 1]} : vector<8x128xf32> to vector<8x32xf32>
    %223 = vector.extract_strided_slice %220 {offsets = [0, 32], sizes = [8, 32], strides = [1, 1]} : vector<8x128xf32> to vector<8x32xf32>
    %224 = vector.extract_strided_slice %221 {offsets = [0, 64], sizes = [8, 32], strides = [1, 1]} : vector<8x128xf32> to vector<8x32xf32>
    %225 = vector.extract_strided_slice %220 {offsets = [0, 96], sizes = [8, 32], strides = [1, 1]} : vector<8x128xf32> to vector<8x32xf32>
    %226 = arith.mulf %223, %212 : vector<8x32xf32>
    %227 = arith.mulf %222, %224 : vector<8x32xf32>
    %228 = arith.addf %226, %227 : vector<8x32xf32>
    %229 = math.tanh %228 : vector<8x32xf32>
    %230 = arith.mulf %225, %229 : vector<8x32xf32>
    %c7_i32 = arith.constant 7 : i32
    %231 = vector.broadcast %c7_i32 : i32 to vector<8x1xi32>
    %232 = arith.cmpi sgt, %8, %231 : vector<8x1xi32>
    %233 = vector.shape_cast %232 : vector<8x1xi1> to vector<8x1xi1>
    %234 = vector.broadcast %233 : vector<8x1xi1> to vector<8x32xi1>
    %235 = arith.select %234, %230, %9 : vector<8x32xi1>, vector<8x32xf32>
    %236 = vector.shape_cast %232 : vector<8x1xi1> to vector<8x1xi1>
    %237 = vector.broadcast %236 : vector<8x1xi1> to vector<8x32xi1>
    %238 = arith.select %237, %230, %209 : vector<8x32xi1>, vector<8x32xf32>
    %239 = tpu.concatenate %32, %61, %90, %119, %148, %177, %206, %235 in 0 : vector<8x32xf32>, vector<8x32xf32>, vector<8x32xf32>, vector<8x32xf32>, vector<8x32xf32>, vector<8x32xf32>, vector<8x32xf32>, vector<8x32xf32> -> vector<64x32xf32>
    %c0_37 = arith.constant 0 : index
    %c0_38 = arith.constant 0 : index
    %240 = vector.load %arg5[%c0_37, %c0_38] : memref<32x128xf32, #tpu.memory_space<vmem>>, vector<32x128xf32>
    %cst_39 = arith.constant dense<0.000000e+00> : vector<64x128xf32>
    %241 = tpu.matmul %239, %240, %cst_39 {dimension_numbers = #tpu.dot_dimension_numbers<[1], [0], [0], [1], [0, 0, 1, 1], [], []>} : vector<64x32xf32>, vector<32x128xf32>, vector<64x128xf32> -> vector<64x128xf32>
    %c0_40 = arith.constant 0 : index
    %c0_41 = arith.constant 0 : index
    %242 = vector.load %arg6[%c0_40, %c0_41] : memref<1x128xf32, #tpu.memory_space<vmem>>, vector<1x128xf32>
    %243 = vector.broadcast %242 : vector<1x128xf32> to vector<64x128xf32>
    %244 = arith.addf %241, %243 : vector<64x128xf32>
    %c0_42 = arith.constant 0 : index
    %c0_43 = arith.constant 0 : index
    %245 = vector.load %arg9[%c0_42, %c0_43] : memref<64x128xf32, #tpu.memory_space<vmem>>, vector<64x128xf32>
    tpu.vector_store %arg9[%c0_42, %c0_43], %244 {strides = array<i32>} : memref<64x128xf32, #tpu.memory_space<vmem>>, vector<64x128xf32>,
    %c0_44 = arith.constant 0 : index
    %c0_45 = arith.constant 0 : index
    %246 = vector.load %arg7[%c0_44, %c0_45] : memref<32x128xf32, #tpu.memory_space<vmem>>, vector<32x128xf32>
    %cst_46 = arith.constant dense<0.000000e+00> : vector<8x128xf32>
    %247 = tpu.matmul %238, %246, %cst_46 {dimension_numbers = #tpu.dot_dimension_numbers<[1], [0], [0], [1], [0, 0, 1, 1], [], []>} : vector<8x32xf32>, vector<32x128xf32>, vector<8x128xf32> -> vector<8x128xf32>
    %c0_47 = arith.constant 0 : index
    %c0_48 = arith.constant 0 : index
    %248 = vector.load %arg8[%c0_47, %c0_48] : memref<1x128xf32, #tpu.memory_space<vmem>>, vector<1x128xf32>
    %249 = vector.broadcast %248 : vector<1x128xf32> to vector<8x128xf32>
    %250 = arith.addf %247, %249 : vector<8x128xf32>
    %c0_49 = arith.constant 0 : index
    %c0_50 = arith.constant 0 : index
    %251 = vector.load %arg10[%c0_49, %c0_50] : memref<8x128xf32, #tpu.memory_space<vmem>>, vector<8x128xf32>
    tpu.vector_store %arg10[%c0_49, %c0_50], %250 {strides = array<i32>} : memref<8x128xf32, #tpu.memory_space<vmem>>, vector<8x128xf32>,
    return
  }
}

</mosaic_0001>

<bundles_post_ra>
// kernel: tpu_custom_call.1
= control target key start
LH: loop header
LB: loop body
LE: loop exit
PB: predicated region body
PF: predicated region fallthrough
CT: control target
= control target key end

     0   :  { %16 = vsyncpa [#allocation4], 0  ;;  %s1479_s0 = inlined_call_operand.vmem [shape: s32[8,1], index: 0, kind: input, shape index: {}]   ;;  %s1480_s1 = inlined_call_operand.vmem [shape: f32[64,32], index: 1, kind: input, shape index: {}]   ;;  %s1481_s2 = inlined_call_operand.vmem [shape: f32[32,128], index: 2, kind: input, shape index: {}]   ;;  %s1482_s3 = inlined_call_operand.vmem [shape: f32[32,128], index: 3, kind: input, shape index: {}]   ;;  %s1483_s4 = inlined_call_operand.vmem [shape: f32[1,128], index: 4, kind: input, shape index: {}]   ;;  %s1484_s5 = inlined_call_operand.vmem [shape: f32[32,128], index: 5, kind: input, shape index: {}]   ;;  %s1485_s6 = inlined_call_operand.vmem [shape: f32[1,128], index: 6, kind: input, shape index: {}]   ;;  %s1486_s7 = inlined_call_operand.hbm [shape: f32[32,128], index: 7, kind: input, shape index: {}]   ;;  %s1487_s8 = inlined_call_operand.vmem [shape: f32[1,128], index: 8, kind: input, shape index: {}]   ;;  %s1488_s9 = inlined_call_operand.hbm [shape: f32[64,128], index: 9, kind: output, shape index: {0}]   ;;  %s1489_s10 = inlined_call_operand.hbm [shape: f32[8,128], index: 10, kind: output, shape index: {1}]  }
   0x1   :  { %17 = vsyncpa [#allocation5], 0 }
   0x2   :  { %18 = vsyncpa [#allocation8], 0  ;;  %s37_s15 = sshll.u32 %s1486_s7, 4  ;;  %s1085_s16 = smov [#allocation3]   ;;  %s38_s15 = int_to_ptr.hbm [resolvable:$true] %s37_s15 }
   0x3   :  { %s39_s17 = sshll.u32 %s1085_s16, 4  ;;  %s1086_s18 = smov 128   ;;  %s40_s17 = int_to_ptr.vmem [resolvable:$true] %s39_s17 }
   0x4   :  { %s1087_s19 = smov 8  }
   0x5   :  { %45 = dma.hbm_to_vmem [thread:$0]  %s38_s15, 512, %s40_s17, [#allocation4], %s1086_s18, %s1086_s18, %s1087_s19  }
   0x6   :  { %1079 = dma.done.wait [#allocation4], 512  }
   0x7   :  { %1080 = vsyncadd [#allocation4], 4294966784  ;;  %v63_v0 = vld [vmem:[%s1481_s2 + $0x18] sm:$0xff]  ;;  %v62_v1 = vld [vmem:[%s1481_s2 + $0x10] sm:$0xff]  ;;  %vm68_vm0 = vcmask 261120   ;;  %v1088_v10 = vmov 0.0  }
   0x8   :  { %920 = vmatpush.msra.mxu1 %v63_v0  ;;  %105 = vmatpush.msra.mxu0 %v63_v0  ;;  %v1164_v2 = vld [vmem:[%s1482_s3 + $0x18] sm:$0xff]  ;;  %v61_v3 = vld [vmem:[%s1481_s2 + $0x8] sm:$0xff]  ;;  %v1174_v4 = vld [vmem:[%s1482_s3 + $0x10] sm:$0xff]  ;;  %s1089_s21 = smov 64   ;;  %v1091_v33 = vmov 0   ;;  %s1093_s25 = smov [#allocation6]  }
   0x9   :  { %235 = vmatpush.msra.mxu2 %v1164_v2  ;;  %308 = vmatpush.msra.mxu3 %v1164_v2  ;;  %v60_v5 = vld [vmem:[%s1481_s2] sm:$0xff]  ;;  %v59_v6 = vld [vmem:[%s1480_s1 + $0x38] sm:$0xff]  ;;  %v1187_v7 = vld [vmem:[%s1482_s3 + $0x8] sm:$0xff]  ;;  %s857_s26 = sshll.u32 %s1093_s25, 4  ;;  %s859_s29 = sshll.u32 %s1488_s9, 4  ;;  %s858_s26 = int_to_ptr.vmem [resolvable:$true] %s857_s26  ;;  %s860_s29 = int_to_ptr.hbm [resolvable:$true] %s859_s29 }
   0xa   :  { %921 = vmatpush.msra.mxu1 %v62_v1  ;;  %106 = vmatpush.msra.mxu0 %v62_v1  ;;  %v52_v8 = vld [vmem:[%s1480_s1] sm:$0xff]  ;;  %v53_v44 = vld [vmem:[%s1480_s1 + $0x8] sm:$0xff] }
   0xb   :  { %236 = vmatpush.msra.mxu2 %v1174_v4  ;;  %309 = vmatpush.msra.mxu3 %v1174_v4  ;;  %v1199_v9 = vld [vmem:[%s1482_s3] sm:$0xff] }
   0xc   :  { %922 = vmatpush.msra.mxu1 %v61_v3  ;;  %107 = vmatpush.msra.mxu0 %v61_v3  ;;  %v1228_v13 = vld [vmem:[%s1483_s4] ss:$0 sm:$0xff]  ;;  %s1090_s4 = smov 32  }
   0xd   :  { %237 = vmatpush.msra.mxu2 %v1187_v7  ;;  %310 = vmatpush.msra.mxu3 %v1187_v7  ;;  %v1239_v38 = vld [vmem:[%s1479_s0] sm:$0xff]  ;;  %s873_s0 = sshll.u32 %s1489_s10, 4  ;;  %s874_s0 = int_to_ptr.hbm [resolvable:$true] %s873_s0 }
   0xe   :  { %923 = vmatpush.msra.mxu1 %v60_v5  ;;  %108 = vmatpush.msra.mxu0 %v60_v5  ;;  %vm209_vm5 = vcmp.gt.s32.totalorder %v1239_v38, 0  ;;  %vm281_vm7 = vcmp.gt.s32.totalorder %v1239_v38, 1  ;;  %vm354_vm13 = vcmp.gt.s32.totalorder %v1239_v38, 2 }
   0xf   :  { %895 = vmatmul.msk.f32.vlgmr.msra.gmra.mxu1 %vm68_vm0, %v59_v6  ;;  %888 = vmatmul.msk.f32.vlgmr.msra.gmra.mxu0 %vm68_vm0, %v52_v8  ;;  %v210_v39 = vsel %vm209_vm5, 1, %v1091_v33  ;;  %v282_v54 = vsel %vm281_vm7, 1, %v1091_v33  ;;  %vm500_vm5 = vcmp.gt.s32.totalorder %v1239_v38, 4 }
  0x10   :  { %163 = vmatpush.msrb.mxu1 %v1164_v2  ;;  %238 = vmatpush.msra.mxu2 %v1199_v9 }
  0x11   :  { %311 = vmatpush.msra.mxu3 %v1199_v9  ;;  %937 = vset.pattern.permute.xlu1 %v1091_v33 }
  0x12   :  { %454 = vmatpush.msrb.mxu2 %v1164_v2  ;;  %164 = vmatpush.msrb.mxu1 %v1174_v4 }
  0x13   :  { %527 = vmatpush.msrb.mxu3 %v1164_v2  ;;  %938 = vset.pattern.permute.xlu2 %v1091_v33 }
  0x14   :  { %455 = vmatpush.msrb.mxu2 %v1174_v4  ;;  %165 = vmatpush.msrb.mxu1 %v1187_v7 }
  0x15   :  { %528 = vmatpush.msrb.mxu3 %v1174_v4  ;;  %939 = vset.pattern.permute.xlu0 %v1091_v33 }
  0x16   :  { %456 = vmatpush.msrb.mxu2 %v1187_v7  ;;  %166 = vmatpush.msrb.mxu1 %v1199_v9 }
  0x17   :  { %529 = vmatpush.msrb.mxu3 %v1187_v7  ;;  %167 = vmatmul.f32.vlgmr.msrb.gmra.mxu1 %v1088_v10 }
  0x18   :  { %457 = vmatpush.msrb.mxu2 %v1199_v9  ;;  %381 = vmatpush.msra.mxu1 %v1164_v2 }
  0x19   :  { %530 = vmatpush.msrb.mxu3 %v1199_v9  ;;  %889 = vmatmul.msk.f32.gmra.mxu0 %vm68_vm0, %v53_v44  ;;  %v55_v44 = vld [vmem:[%s1480_s1 + $0x18] sm:$0xff] }
  0x1a   :  { %382 = vmatpush.msra.mxu1 %v1174_v4 }
  0x1c   :  { %383 = vmatpush.msra.mxu1 %v1187_v7 }
  0x1e   :  { %384 = vmatpush.msra.mxu1 %v1199_v9 }
  0x20   :  { %600 = vmatpush.msrb.mxu1 %v1164_v2 }
  0x22   :  { %601 = vmatpush.msrb.mxu1 %v1174_v4 }
  0x24   :  { %602 = vmatpush.msrb.mxu1 %v1187_v7 }
  0x26   :  { %603 = vmatpush.msrb.mxu1 %v1199_v9 }
  0x8c   :  { %v1223_v11 = vpop.f32.mrf.mxu1  ;;  %v110_v12 = vpop.f32.mrf.mxu0 }
  0x8d   :  { %v111_v14 = vadd.f32 %v1228_v13, %v110_v12 }
  0x94   :  { %v168_v15 = vpop.f32.mrf.mxu1 }
  0x95   :  { %v171_v16 = vadd.f32 %v168_v15, %v111_v14  ;;  %v54_v14 = vld [vmem:[%s1480_s1 + $0x10] sm:$0xff] }
  0x96   :  { %v113_v46 = vpop.f32.mrf.mxu0  ;;  %890 = vmatmul.msk.f32.gmra.mxu0 %vm68_vm0, %v54_v14 }
  0x97   :  { %943 = vtanh.f32 %v171_v16  ;;  %v896_v18 = vmul.f32 -1.442695, %v171_v16  ;;  %v114_v47 = vadd.f32 %v1228_v13, %v113_v46 }
  0x99   :  { %945 = vpow2.f32 %v896_v18 }
  0x9d   :  { %v944_v17 = vpop.eup %943 }
  0x9e   :  { %194 = vrot.lane.b32.xlu0 %v944_v17, %s1089_s21  ;;  %891 = vmatmul.msk.f32.gmra.mxu0 %vm68_vm0, %v55_v44 }
  0x9f   :  { %v946_v19 = vpop.eup %945 }
  0xa0   :  { %v175_v20 = vadd.f32 1.0, %v946_v19 }
  0xa2   :  { %947 = vrcp.f32 %v175_v20  ;;  %v187_v26 = vand.u32 2147483648, %v175_v20  ;;  %vm181_vm2 = vweird.f32 %v175_v20  ;;  %v185_v27 = vand.u32 2147483647, %v175_v20 }
  0xa4   :  { %v188_v29 = vor.u32 1.1754944e-38, %v187_v26  ;;  %vm186_vm4 = vcmp.eq.f32.partialorder %v185_v27, 8.507059e+37 }
  0xa8   :  { %v948_v21 = vpop.eup %947 }
  0xa9   :  { %v177_v22 = vmul.f32 %v948_v21, %v175_v20  ;;  %vm182_vm1 = vweird.f32 %v948_v21 }
  0xaa   :  { %vm183_vm3 = vmor %vm181_vm2, %vm182_vm1 }
  0xab   :  { %v178_v23 = vsub.f32 1.0, %v177_v22 }
  0xad   :  { %v179_v24 = vmul.f32 %v948_v21, %v178_v23 }
  0xaf   :  { %v180_v25 = vadd.f32 %v948_v21, %v179_v24 }
  0xb1   :  { %v184_v28 = vsel %vm183_vm3, %v948_v21, %v180_v25  ;;  %v355_v21 = vsel %vm354_vm13, 1, %v1091_v33 }
  0xb2   :  { %v189_v31 = vsel %vm186_vm4, %v188_v29, %v184_v28  ;;  %vm427_vm4 = vcmp.gt.s32.totalorder %v1239_v38, 3 }
  0xb3   :  { %v192_v34 = vmul.f32 0.0, %v189_v31 }
 0x110   :  { %v195_v30 = vpop.permute.xlu0 %194 }
 0x111   :  { %v197_v32 = vmul.f32 %v195_v30, %v189_v31 }
 0x113   :  { %199 = vrot.lane.b32.xlu0 %v197_v32, %s1090_s4  ;;  %v116_v16 = vpop.f32.mrf.mxu0 }
 0x114   :  { %v117_v17 = vadd.f32 %v1228_v13, %v116_v16 }
 0x185   :  { %v200_v35 = vpop.permute.xlu0 %199 }
 0x186   :  { %v202_v36 = vadd.f32 %v200_v35, %v192_v34 }
 0x188   :  { %949 = vtanh.f32 %v202_v36 }
 0x18e   :  { %v950_v37 = vpop.eup %949 }
 0x18f   :  { %205 = vrot.lane.b32.xlu1 %v950_v37, %s1089_s21 }
 0x197   :  { %212 = vperm.xlu1 %937, %v210_v39  }
 0x201   :  { %v206_v40 = vpop.permute.xlu1 %205 }
 0x202   :  { %v208_v41 = vmul.f32 %v206_v40, %v189_v31 }
 0x209   :  { %v213_v42 = vpop.permute.xlu1 %212 }
 0x20a   :  { %vm214_vm6 = vcmp.eq.s32.totalorder %v213_v42, 1 }
 0x20b   :  { %v215_v43 = vsel %vm214_vm6, %v208_v41, 0.0  ;;  %v216_v3 = vsel %vm214_vm6, %v202_v36, 0.0 }
 0x20c   :  { %219 = vrot.lane.b32.xlu2 %v215_v43, %s1090_s4 }
 0x266   :  { %v1250_v45 = vpop.permute.xlu2 %219 }
 0x267   :  { %897 = vmatmul.msk.f32.vlgmr.msra.gmra.mxu2 %vm68_vm0, %v1250_v45 }
 0x268   :  { %673 = vmatpush.msra.mxu2 %v1164_v2 }
 0x26a   :  { %674 = vmatpush.msra.mxu2 %v1174_v4 }
 0x26c   :  { %675 = vmatpush.msra.mxu2 %v1187_v7 }
 0x26e   :  { %676 = vmatpush.msra.mxu2 %v1199_v9 }
 0x2ea   :  { %v240_v48 = vpop.f32.mrf.mxu2 }
 0x2eb   :  { %v243_v49 = vadd.f32 %v240_v48, %v114_v47 }
 0x2ed   :  { %951 = vtanh.f32 %v243_v49  ;;  %v898_v51 = vmul.f32 -1.442695, %v243_v49 }
 0x2ef   :  { %953 = vpow2.f32 %v898_v51  ;;  %v119_v51 = vpop.f32.mrf.mxu0 }
 0x2f3   :  { %v952_v50 = vpop.eup %951 }
 0x2f4   :  { %266 = vrot.lane.b32.xlu2 %v952_v50, %s1089_s21 }
 0x2f5   :  { %v954_v52 = vpop.eup %953 }
 0x2f6   :  { %v247_v53 = vadd.f32 1.0, %v954_v52  ;;  %v120_v52 = vadd.f32 %v1228_v13, %v119_v51 }
 0x2f8   :  { %955 = vrcp.f32 %v247_v53  ;;  %v259_v60 = vand.u32 2147483648, %v247_v53  ;;  %vm253_vm9 = vweird.f32 %v247_v53  ;;  %v257_v61 = vand.u32 2147483647, %v247_v53 }
 0x2fa   :  { %v260_v63 = vor.u32 1.1754944e-38, %v259_v60  ;;  %vm258_vm11 = vcmp.eq.f32.partialorder %v257_v61, 8.507059e+37  ;;  %v501_v60 = vsel %vm500_vm5, 1, %v1091_v33 }
 0x2fc   :  { %284 = vperm.xlu2 %938, %v282_v54  }
 0x2fe   :  { %v956_v55 = vpop.eup %955 }
 0x2ff   :  { %v249_v56 = vmul.f32 %v956_v55, %v247_v53  ;;  %vm254_vm8 = vweird.f32 %v956_v55 }
 0x300   :  { %vm255_vm10 = vmor %vm253_vm9, %vm254_vm8 }
 0x301   :  { %v250_v57 = vsub.f32 1.0, %v249_v56 }
 0x303   :  { %v251_v58 = vmul.f32 %v956_v55, %v250_v57 }
 0x305   :  { %v252_v59 = vadd.f32 %v956_v55, %v251_v58 }
 0x307   :  { %v256_v62 = vsel %vm255_vm10, %v956_v55, %v252_v59  ;;  %v428_v59 = vsel %vm427_vm4, 1, %v1091_v33 }
 0x308   :  { %v261_v1 = vsel %vm258_vm11, %v260_v63, %v256_v62 }
 0x309   :  { %v264_v4 = vmul.f32 %v261_v1, %v216_v3 }
 0x34e   :  { %v267_v0 = vpop.permute.xlu2 %266 }
 0x34f   :  { %v269_v2 = vmul.f32 %v267_v0, %v261_v1 }
 0x351   :  { %271 = vrot.lane.b32.xlu0 %v269_v2, %s1090_s4 }
 0x356   :  { %v1265_v8 = vpop.permute.xlu2 %284 }
 0x357   :  { %vm286_vm12 = vcmp.eq.s32.totalorder %v1265_v8, 1 }
 0x3c3   :  { %v272_v5 = vpop.permute.xlu0 %271 }
 0x3c4   :  { %v274_v6 = vadd.f32 %v272_v5, %v264_v4 }
 0x3c6   :  { %957 = vtanh.f32 %v274_v6  ;;  %v289_v39 = vsel %vm286_vm12, %v274_v6, %v216_v3 }
 0x3cc   :  { %v958_v7 = vpop.eup %957 }
 0x3cd   :  { %277 = vrot.lane.b32.xlu1 %v958_v7, %s1089_s21 }
 0x43f   :  { %v278_v9 = vpop.permute.xlu1 %277 }
 0x440   :  { %v1267_v10 = vmul.f32 %v278_v9, %v261_v1 }
 0x442   :  { %v288_v12 = vsel %vm286_vm12, %v1267_v10, %v215_v43 }
 0x443   :  { %292 = vrot.lane.b32.xlu0 %v288_v12, %s1090_s4 }
 0x4b5   :  { %v293_v15 = vpop.permute.xlu0 %292 }
 0x4b6   :  { %899 = vmatmul.msk.f32.vlgmr.msra.gmra.mxu3 %vm68_vm0, %v293_v15 }
 0x539   :  { %v313_v18 = vpop.f32.mrf.mxu3 }
 0x53a   :  { %v316_v19 = vadd.f32 %v313_v18, %v117_v17 }
 0x53c   :  { %959 = vtanh.f32 %v316_v19  ;;  %v900_v22 = vmul.f32 -1.442695, %v316_v19 }
 0x53e   :  { %961 = vpow2.f32 %v900_v22  ;;  %v56_v22 = vld [vmem:[%s1480_s1 + $0x20] sm:$0xff] }
 0x53f   :  { %892 = vmatmul.msk.f32.gmra.mxu0 %vm68_vm0, %v56_v22 }
 0x542   :  { %v960_v20 = vpop.eup %959 }
 0x543   :  { %339 = vrot.lane.b32.xlu1 %v960_v20, %s1089_s21 }
 0x544   :  { %v962_v23 = vpop.eup %961 }
 0x545   :  { %v320_v24 = vadd.f32 1.0, %v962_v23 }
 0x547   :  { %963 = vrcp.f32 %v320_v24  ;;  %v332_v30 = vand.u32 2147483648, %v320_v24  ;;  %vm326_vm15 = vweird.f32 %v320_v24  ;;  %v330_v31 = vand.u32 2147483647, %v320_v24 }
 0x549   :  { %v333_v34 = vor.u32 1.1754944e-38, %v332_v30  ;;  %vm331_vm2 = vcmp.eq.f32.partialorder %v330_v31, 8.507059e+37 }
 0x54b   :  { %357 = vperm.xlu1 %937, %v355_v21  }
 0x54d   :  { %v964_v25 = vpop.eup %963 }
 0x54e   :  { %v322_v26 = vmul.f32 %v964_v25, %v320_v24  ;;  %vm327_vm14 = vweird.f32 %v964_v25 }
 0x54f   :  { %vm328_vm1 = vmor %vm326_vm15, %vm327_vm14 }
 0x550   :  { %v323_v27 = vsub.f32 1.0, %v322_v26 }
 0x552   :  { %v324_v28 = vmul.f32 %v964_v25, %v323_v27 }
 0x554   :  { %v325_v29 = vadd.f32 %v964_v25, %v324_v28 }
 0x556   :  { %v329_v32 = vsel %vm328_vm1, %v964_v25, %v325_v29 }
 0x557   :  { %v334_v36 = vsel %vm331_vm2, %v333_v34, %v329_v32  ;;  %vm573_vm2 = vcmp.gt.s32.totalorder %v1239_v38, 5 }
 0x558   :  { %v337_v40 = vmul.f32 %v334_v36, %v289_v39 }
 0x5b5   :  { %v340_v35 = vpop.permute.xlu1 %339 }
 0x5b6   :  { %v342_v37 = vmul.f32 %v340_v35, %v334_v36 }
 0x5b8   :  { %344 = vrot.lane.b32.xlu2 %v342_v37, %s1090_s4 }
 0x5bc   :  { %v122_v24 = vpop.f32.mrf.mxu0 }
 0x5bd   :  { %v1291_v46 = vpop.permute.xlu1 %357  ;;  %v123_v25 = vadd.f32 %v1228_v13, %v122_v24 }
 0x5be   :  { %vm359_vm3 = vcmp.eq.s32.totalorder %v1291_v46, 1 }
 0x612   :  { %v345_v41 = vpop.permute.xlu2 %344 }
 0x613   :  { %v347_v42 = vadd.f32 %v345_v41, %v337_v40 }
 0x615   :  { %965 = vtanh.f32 %v347_v42 }
 0x61b   :  { %v966_v43 = vpop.eup %965 }
 0x61c   :  { %350 = vrot.lane.b32.xlu0 %v966_v43, %s1089_s21 }
 0x68e   :  { %v351_v47 = vpop.permute.xlu0 %350 }
 0x68f   :  { %v1293_v48 = vmul.f32 %v351_v47, %v334_v36 }
 0x691   :  { %v361_v49 = vsel %vm359_vm3, %v1293_v48, %v288_v12  ;;  %v362_v12 = vsel %vm359_vm3, %v347_v42, %v289_v39 }
 0x692   :  { %365 = vrot.lane.b32.xlu2 %v361_v49, %s1090_s4 }
 0x6ec   :  { %v366_v50 = vpop.permute.xlu2 %365 }
 0x6ed   :  { %901 = vmatmul.msk.f32.vlgmr.msra.gmra.mxu1 %vm68_vm0, %v366_v50 }
 0x76a   :  { %v386_v53 = vpop.f32.mrf.mxu1 }
 0x76b   :  { %v389_v54 = vadd.f32 %v386_v53, %v120_v52 }
 0x76d   :  { %967 = vtanh.f32 %v389_v54  ;;  %v902_v56 = vmul.f32 -1.442695, %v389_v54 }
 0x76f   :  { %969 = vpow2.f32 %v902_v56 }
 0x773   :  { %v968_v55 = vpop.eup %967 }
 0x774   :  { %412 = vrot.lane.b32.xlu0 %v968_v55, %s1089_s21 }
 0x775   :  { %v970_v57 = vpop.eup %969 }
 0x776   :  { %v393_v58 = vadd.f32 1.0, %v970_v57 }
 0x778   :  { %971 = vrcp.f32 %v393_v58  ;;  %v405_v2 = vand.u32 2147483648, %v393_v58  ;;  %vm399_vm7 = vweird.f32 %v393_v58  ;;  %v403_v3 = vand.u32 2147483647, %v393_v58 }
 0x77a   :  { %v406_v5 = vor.u32 1.1754944e-38, %v405_v2  ;;  %vm404_vm9 = vcmp.eq.f32.partialorder %v403_v3, 8.507059e+37 }
 0x77c   :  { %430 = vperm.xlu0 %939, %v428_v59  }
 0x77e   :  { %v972_v61 = vpop.eup %971 }
 0x77f   :  { %v395_v62 = vmul.f32 %v972_v61, %v393_v58  ;;  %vm400_vm6 = vweird.f32 %v972_v61  ;;  %v57_v58 = vld [vmem:[%s1480_s1 + $0x28] sm:$0xff] }
 0x780   :  { %vm401_vm8 = vmor %vm399_vm7, %vm400_vm6  ;;  %893 = vmatmul.msk.f32.gmra.mxu0 %vm68_vm0, %v57_v58 }
 0x781   :  { %v396_v63 = vsub.f32 1.0, %v395_v62 }
 0x783   :  { %v397_v0 = vmul.f32 %v972_v61, %v396_v63 }
 0x784   :  { %503 = vperm.xlu0 %939, %v501_v60  }
 0x785   :  { %v398_v1 = vadd.f32 %v972_v61, %v397_v0 }
 0x787   :  { %v402_v4 = vsel %vm401_vm8, %v972_v61, %v398_v1  ;;  %v574_v1 = vsel %vm573_vm2, 1, %v1091_v33 }
 0x788   :  { %v407_v7 = vsel %vm404_vm9, %v406_v5, %v402_v4  ;;  %vm646_vm9 = vcmp.gt.s32.totalorder %v1239_v38, 6 }
 0x789   :  { %v410_v14 = vmul.f32 %v407_v7, %v362_v12 }
 0x7e6   :  { %v413_v6 = vpop.permute.xlu0 %412 }
 0x7e7   :  { %v415_v9 = vmul.f32 %v413_v6, %v407_v7 }
 0x7e9   :  { %417 = vrot.lane.b32.xlu1 %v415_v9, %s1090_s4 }
 0x7ee   :  { %v1311_v18 = vpop.permute.xlu0 %430 }
 0x7ef   :  { %vm432_vm10 = vcmp.eq.s32.totalorder %v1311_v18, 1 }
 0x7f6   :  { %v1331_v54 = vpop.permute.xlu0 %503 }
 0x7f7   :  { %vm505_vm1 = vcmp.eq.s32.totalorder %v1331_v54, 1 }
 0x7fd   :  { %v125_v60 = vpop.f32.mrf.mxu0 }
 0x7fe   :  { %v126_v61 = vadd.f32 %v1228_v13, %v125_v60 }
 0x85b   :  { %v418_v15 = vpop.permute.xlu1 %417 }
 0x85c   :  { %v420_v16 = vadd.f32 %v418_v15, %v410_v14 }
 0x85e   :  { %973 = vtanh.f32 %v420_v16 }
 0x864   :  { %v974_v17 = vpop.eup %973 }
 0x865   :  { %423 = vrot.lane.b32.xlu2 %v974_v17, %s1089_s21 }
 0x8bf   :  { %v424_v19 = vpop.permute.xlu2 %423 }
 0x8c0   :  { %v1313_v20 = vmul.f32 %v424_v19, %v407_v7 }
 0x8c2   :  { %v434_v21 = vsel %vm432_vm10, %v1313_v20, %v361_v49  ;;  %v435_v49 = vsel %vm432_vm10, %v420_v16, %v362_v12 }
 0x8c3   :  { %438 = vrot.lane.b32.xlu1 %v434_v21, %s1090_s4 }
 0x935   :  { %v439_v23 = vpop.permute.xlu1 %438 }
 0x936   :  { %903 = vmatmul.msk.f32.vlgmr.msrb.gmra.mxu2 %vm68_vm0, %v439_v23 }
 0x9b9   :  { %v459_v26 = vpop.f32.mrf.mxu2 }
 0x9ba   :  { %v462_v27 = vadd.f32 %v459_v26, %v123_v25 }
 0x9bc   :  { %975 = vtanh.f32 %v462_v27  ;;  %v904_v29 = vmul.f32 -1.442695, %v462_v27 }
 0x9be   :  { %977 = vpow2.f32 %v904_v29 }
 0x9c2   :  { %v976_v28 = vpop.eup %975 }
 0x9c3   :  { %485 = vrot.lane.b32.xlu2 %v976_v28, %s1089_s21  ;;  %v58_v28 = vld [vmem:[%s1480_s1 + $0x30] sm:$0xff] }
 0x9c4   :  { %v978_v30 = vpop.eup %977  ;;  %894 = vmatmul.msk.f32.gmra.mxu0 %vm68_vm0, %v58_v28 }
 0x9c5   :  { %v466_v31 = vadd.f32 1.0, %v978_v30 }
 0x9c7   :  { %979 = vrcp.f32 %v466_v31  ;;  %v478_v39 = vand.u32 2147483648, %v466_v31  ;;  %vm472_vm13 = vweird.f32 %v466_v31  ;;  %v476_v40 = vand.u32 2147483647, %v466_v31 }
 0x9c9   :  { %v479_v42 = vor.u32 1.1754944e-38, %v478_v39  ;;  %vm477_vm15 = vcmp.eq.f32.partialorder %v476_v40, 8.507059e+37 }
 0x9cd   :  { %v980_v32 = vpop.eup %979 }
 0x9ce   :  { %v468_v34 = vmul.f32 %v980_v32, %v466_v31  ;;  %vm473_vm11 = vweird.f32 %v980_v32 }
 0x9cf   :  { %vm474_vm14 = vmor %vm472_vm13, %vm473_vm11 }
 0x9d0   :  { %v469_v35 = vsub.f32 1.0, %v468_v34 }
 0x9d2   :  { %v470_v36 = vmul.f32 %v980_v32, %v469_v35 }
 0x9d4   :  { %v471_v37 = vadd.f32 %v980_v32, %v470_v36 }
 0x9d6   :  { %v475_v41 = vsel %vm474_vm14, %v980_v32, %v471_v37 }
 0x9d7   :  { %v480_v44 = vsel %vm477_vm15, %v479_v42, %v475_v41  ;;  %v647_v41 = vsel %vm646_vm9, 1, %v1091_v33 }
 0x9d8   :  { %v483_v50 = vmul.f32 %v480_v44, %v435_v49 }
 0xa1d   :  { %v486_v43 = vpop.permute.xlu2 %485 }
 0xa1e   :  { %v488_v47 = vmul.f32 %v486_v43, %v480_v44 }
 0xa20   :  { %490 = vrot.lane.b32.xlu1 %v488_v47, %s1090_s4 }
 0xa41   :  { %v128_v35 = vpop.f32.mrf.mxu0 }
 0xa42   :  { %v129_v36 = vadd.f32 %v1228_v13, %v128_v35 }
 0xa92   :  { %v491_v51 = vpop.permute.xlu1 %490 }
 0xa93   :  { %v493_v52 = vadd.f32 %v491_v51, %v483_v50 }
 0xa95   :  { %981 = vtanh.f32 %v493_v52  ;;  %v508_v23 = vsel %vm505_vm1, %v493_v52, %v435_v49 }
 0xa9b   :  { %v982_v53 = vpop.eup %981 }
 0xa9c   :  { %496 = vrot.lane.b32.xlu2 %v982_v53, %s1089_s21 }
 0xaf6   :  { %v497_v55 = vpop.permute.xlu2 %496 }
 0xaf7   :  { %v1333_v56 = vmul.f32 %v497_v55, %v480_v44 }
 0xaf9   :  { %v507_v57 = vsel %vm505_vm1, %v1333_v56, %v434_v21 }
 0xafa   :  { %511 = vrot.lane.b32.xlu1 %v507_v57, %s1090_s4 }
 0xb6c   :  { %v512_v59 = vpop.permute.xlu1 %511 }
 0xb6d   :  { %905 = vmatmul.msk.f32.vlgmr.msrb.gmra.mxu3 %vm68_vm0, %v512_v59 }
 0xbf0   :  { %v532_v62 = vpop.f32.mrf.mxu3 }
 0xbf1   :  { %v535_v63 = vadd.f32 %v532_v62, %v126_v61 }
 0xbf3   :  { %983 = vtanh.f32 %v535_v63  ;;  %v906_v2 = vmul.f32 -1.442695, %v535_v63 }
 0xbf5   :  { %985 = vpow2.f32 %v906_v2 }
 0xbf9   :  { %v984_v0 = vpop.eup %983 }
 0xbfa   :  { %558 = vrot.lane.b32.xlu2 %v984_v0, %s1089_s21 }
 0xbfb   :  { %v986_v3 = vpop.eup %985 }
 0xbfc   :  { %v539_v4 = vadd.f32 1.0, %v986_v3 }
 0xbfe   :  { %987 = vrcp.f32 %v539_v4  ;;  %v551_v14 = vand.u32 2147483648, %v539_v4  ;;  %vm545_vm5 = vweird.f32 %v539_v4  ;;  %v549_v15 = vand.u32 2147483647, %v539_v4 }
 0xc00   :  { %v552_v17 = vor.u32 1.1754944e-38, %v551_v14  ;;  %vm550_vm7 = vcmp.eq.f32.partialorder %v549_v15, 8.507059e+37  ;;  %v727_v14 = vld [vmem:[%s1484_s5] sm:$0xff] }
 0xc02   :  { %576 = vperm.xlu2 %938, %v574_v1  }
 0xc04   :  { %v988_v5 = vpop.eup %987 }
 0xc05   :  { %v541_v6 = vmul.f32 %v988_v5, %v539_v4  ;;  %vm546_vm4 = vweird.f32 %v988_v5 }
 0xc06   :  { %vm547_vm6 = vmor %vm545_vm5, %vm546_vm4  ;;  %vm719_vm4 = vcmp.gt.s32.totalorder %v1239_v38, 7 }
 0xc07   :  { %v542_v7 = vsub.f32 1.0, %v541_v6 }
 0xc09   :  { %v543_v9 = vmul.f32 %v988_v5, %v542_v7  ;;  %v730_v7 = vld [vmem:[%s1484_s5 + $0x18] sm:$0xff] }
 0xc0a   :  { %782 = vmatpush.msrb.mxu2 %v730_v7  ;;  %924 = vmatpush.msra.mxu3 %v730_v7 }
 0xc0b   :  { %v544_v12 = vadd.f32 %v988_v5, %v543_v9  ;;  %v729_v9 = vld [vmem:[%s1484_s5 + $0x10] sm:$0xff] }
 0xc0c   :  { %783 = vmatpush.msrb.mxu2 %v729_v9  ;;  %925 = vmatpush.msra.mxu3 %v729_v9 }
 0xc0d   :  { %v548_v16 = vsel %vm547_vm6, %v988_v5, %v544_v12  ;;  %v728_v12 = vld [vmem:[%s1484_s5 + $0x8] sm:$0xff] }
 0xc0e   :  { %v553_v21 = vsel %vm550_vm7, %v552_v17, %v548_v16  ;;  %784 = vmatpush.msrb.mxu2 %v728_v12  ;;  %926 = vmatpush.msra.mxu3 %v728_v12  ;;  %v132_v16 = vadd.f32 %v1228_v13, %v1223_v11  ;;  %v360_v13 = vsel %vm359_vm3, %v1293_v48, 0.0 }
 0xc0f   :  { %v556_v24 = vmul.f32 %v553_v21, %v508_v23 }
 0xc10   :  { %785 = vmatpush.msrb.mxu2 %v727_v14  ;;  %927 = vmatpush.msra.mxu3 %v727_v14 }
 0xc54   :  { %v559_v19 = vpop.permute.xlu2 %558 }
 0xc55   :  { %v561_v22 = vmul.f32 %v559_v19, %v553_v21 }
 0xc57   :  { %563 = vrot.lane.b32.xlu0 %v561_v22, %s1090_s4 }
 0xc5c   :  { %v1357_v29 = vpop.permute.xlu2 %576 }
 0xc5d   :  { %vm578_vm8 = vcmp.eq.s32.totalorder %v1357_v29, 1 }
 0xcc9   :  { %v564_v25 = vpop.permute.xlu0 %563 }
 0xcca   :  { %v566_v26 = vadd.f32 %v564_v25, %v556_v24 }
 0xccc   :  { %989 = vtanh.f32 %v566_v26  ;;  %v1374_v62 = vsel %vm578_vm8, %v566_v26, %v508_v23 }
 0xcd2   :  { %v990_v27 = vpop.eup %989 }
 0xcd3   :  { %569 = vrot.lane.b32.xlu1 %v990_v27, %s1089_s21 }
 0xd45   :  { %v570_v30 = vpop.permute.xlu1 %569 }
 0xd46   :  { %v1359_v31 = vmul.f32 %v570_v30, %v553_v21  ;;  %v1413_v21 = vld [vmem:[%s1485_s6] ss:$0 sm:$0xff] }
 0xd48   :  { %v580_v32 = vsel %vm578_vm8, %v1359_v31, %v507_v57  ;;  %v579_v11 = vsel %vm578_vm8, %v1359_v31, 0.0 }
 0xd49   :  { %584 = vrot.lane.b32.xlu0 %v580_v32, %s1090_s4 }
 0xdbb   :  { %v585_v34 = vpop.permute.xlu0 %584 }
 0xdbc   :  { %907 = vmatmul.msk.f32.vlgmr.msrb.gmra.mxu1 %vm68_vm0, %v585_v34 }
 0xe39   :  { %v605_v37 = vpop.f32.mrf.mxu1 }
 0xe3a   :  { %v608_v39 = vadd.f32 %v605_v37, %v129_v36  ;;  %v433_v37 = vsel %vm432_vm10, %v1313_v20, 0.0 }
 0xe3c   :  { %991 = vtanh.f32 %v608_v39  ;;  %v908_v42 = vmul.f32 -1.442695, %v608_v39  ;;  %v287_v39 = vsel %vm286_vm12, %v1267_v10, 0.0 }
 0xe3e   :  { %993 = vpow2.f32 %v908_v42 }
 0xe42   :  { %v992_v40 = vpop.eup %991 }
 0xe43   :  { %631 = vrot.lane.b32.xlu1 %v992_v40, %s1089_s21 }
 0xe44   :  { %v994_v43 = vpop.eup %993 }
 0xe45   :  { %v612_v44 = vadd.f32 1.0, %v994_v43 }
 0xe47   :  { %995 = vrcp.f32 %v612_v44  ;;  %v624_v53 = vand.u32 2147483648, %v612_v44  ;;  %vm618_vm13 = vweird.f32 %v612_v44  ;;  %v622_v55 = vand.u32 2147483647, %v612_v44 }
 0xe49   :  { %v625_v58 = vor.u32 1.1754944e-38, %v624_v53  ;;  %vm623_vm15 = vcmp.eq.f32.partialorder %v622_v55, 8.507059e+37 }
 0xe4b   :  { %649 = vperm.xlu1 %937, %v647_v41  }
 0xe4d   :  { %v996_v47 = vpop.eup %995 }
 0xe4e   :  { %v614_v49 = vmul.f32 %v996_v47, %v612_v44  ;;  %vm619_vm11 = vweird.f32 %v996_v47 }
 0xe4f   :  { %vm620_vm14 = vmor %vm618_vm13, %vm619_vm11 }
 0xe50   :  { %v615_v50 = vsub.f32 1.0, %v614_v49 }
 0xe52   :  { %v616_v51 = vmul.f32 %v996_v47, %v615_v50 }
 0xe54   :  { %v617_v52 = vadd.f32 %v996_v47, %v616_v51 }
 0xe56   :  { %v621_v57 = vsel %vm620_vm14, %v996_v47, %v617_v52  ;;  %v506_v47 = vsel %vm505_vm1, %v1333_v56, 0.0 }
 0xe57   :  { %v626_v60 = vsel %vm623_vm15, %v625_v58, %v621_v57  ;;  %v822_v57 = vld [vmem:[#allocation3 + $0x18] sm:$0xff]  ;;  %v821_v58 = vld [vmem:[#allocation3 + $0x10] sm:$0xff] }
 0xe58   :  { %v629_v63 = vmul.f32 %v626_v60, %v1374_v62  ;;  %844 = vmatpush.msra.mxu1 %v822_v57 }
 0xe5a   :  { %845 = vmatpush.msra.mxu1 %v821_v58 }
 0xeb5   :  { %v632_v59 = vpop.permute.xlu1 %631 }
 0xeb6   :  { %v634_v61 = vmul.f32 %v632_v59, %v626_v60  ;;  %v820_v59 = vld [vmem:[#allocation3 + $0x8] sm:$0xff] }
 0xeb7   :  { %846 = vmatpush.msra.mxu1 %v820_v59 }
 0xeb8   :  { %636 = vrot.lane.b32.xlu2 %v634_v61, %s1090_s4 }
 0xebd   :  { %v1381_v3 = vpop.permute.xlu1 %649 }
 0xebe   :  { %vm651_vm2 = vcmp.eq.s32.totalorder %v1381_v3, 1 }
 0xf12   :  { %v637_v0 = vpop.permute.xlu2 %636 }
 0xf13   :  { %v1377_v1 = vadd.f32 %v637_v0, %v629_v63 }
 0xf15   :  { %997 = vtanh.f32 %v1377_v1  ;;  %v654_v40 = vsel %vm651_vm2, %v1377_v1, %v1374_v62 }
 0xf1b   :  { %v998_v2 = vpop.eup %997 }
 0xf1c   :  { %642 = vrot.lane.b32.xlu0 %v998_v2, %s1089_s21 }
 0xf8e   :  { %v643_v4 = vpop.permute.xlu0 %642 }
 0xf8f   :  { %v1383_v5 = vmul.f32 %v643_v4, %v626_v60  ;;  %v819_v60 = vld [vmem:[#allocation3] sm:$0xff] }
 0xf90   :  { %847 = vmatpush.msra.mxu1 %v819_v60 }
 0xf91   :  { %v1389_v6 = vsel %vm651_vm2, %v1383_v5, %v580_v32  ;;  %v652_v50 = vsel %vm651_vm2, %v1383_v5, 0.0 }
 0xf92   :  { %657 = vrot.lane.b32.xlu2 %v1389_v6, %s1090_s4 }
 0xfec   :  { %v658_v15 = vpop.permute.xlu2 %657 }
 0xfed   :  { %909 = vmatmul.msk.f32.vlgmr.msra.gmra.mxu2 %vm68_vm0, %v658_v15  ;;  %v942_v15 = vld [vmem:[%s1487_s8] ss:$0 sm:$0xff] }
 0xff5   :  { %911 = vmatmul.msk.f32.vlgmr.msrb.gmra.mxu2 %vm68_vm0, %v1250_v45  ;;  %v720_v45 = vsel %vm719_vm4, 1, %v1091_v33 }
0x1070   :  { %v678_v17 = vpop.f32.mrf.mxu2 }
0x1071   :  { %v681_v19 = vadd.f32 %v678_v17, %v132_v16 }
0x1073   :  { %999 = vtanh.f32 %v681_v19  ;;  %v910_v25 = vmul.f32 -1.442695, %v681_v19 }
0x1075   :  { %1001 = vpow2.f32 %v910_v25 }
0x1078   :  { %v787_v22 = vpop.f32.mrf.mxu2 }
0x1079   :  { %v1000_v23 = vpop.eup %999  ;;  %v788_v24 = vadd.f32 %v1413_v21, %v787_v22 }
0x107a   :  { %704 = vrot.lane.b32.xlu0 %v1000_v23, %s1089_s21 }
0x107b   :  { %811 = vst [vmem:[#allocation6] sm:$0xff] %v788_v24  ;;  %v1002_v26 = vpop.eup %1001 }
0x107c   :  { %v685_v27 = vadd.f32 1.0, %v1002_v26 }
0x107e   :  { %1003 = vrcp.f32 %v685_v27  ;;  %v697_v29 = vand.u32 2147483648, %v685_v27  ;;  %vm691_vm6 = vweird.f32 %v685_v27  ;;  %v695_v31 = vand.u32 2147483647, %v685_v27 }
0x1080   :  { %v698_v46 = vor.u32 1.1754944e-38, %v697_v29  ;;  %vm696_vm3 = vcmp.eq.f32.partialorder %v695_v31, 8.507059e+37 }
0x1082   :  { %722 = vperm.xlu0 %939, %v720_v45  }
0x1084   :  { %v1004_v38 = vpop.eup %1003 }
0x1085   :  { %v687_v33 = vmul.f32 %v1004_v38, %v685_v27  ;;  %vm692_vm5 = vweird.f32 %v1004_v38 }
0x1086   :  { %vm693_vm7 = vmor %vm691_vm6, %vm692_vm5 }
0x1087   :  { %v688_v28 = vsub.f32 1.0, %v687_v33 }
0x1089   :  { %v689_v30 = vmul.f32 %v1004_v38, %v688_v28 }
0x108a   :  { %750 = vrot.lane.b32.xlu0 %v579_v11, %s1090_s4 }
0x108b   :  { %v690_v32 = vadd.f32 %v1004_v38, %v689_v30 }
0x108d   :  { %v694_v34 = vsel %vm693_vm7, %v1004_v38, %v690_v32 }
0x108e   :  { %v699_v35 = vsel %vm696_vm3, %v698_v46, %v694_v34 }
0x108f   :  { %v702_v41 = vmul.f32 %v699_v35, %v654_v40 }
0x1092   :  { %744 = vrot.lane.b32.xlu0 %v360_v13, %s1090_s4 }
0x10ec   :  { %v705_v48 = vpop.permute.xlu0 %704 }
0x10ed   :  { %v707_v36 = vmul.f32 %v705_v48, %v699_v35 }
0x10ef   :  { %709 = vrot.lane.b32.xlu1 %v707_v36, %s1090_s4 }
0x10f4   :  { %v723_v44 = vpop.permute.xlu0 %722 }
0x10f5   :  { %vm724_vm12 = vcmp.eq.s32.totalorder %v723_v44, 1 }
0x10f7   :  { %746 = vrot.lane.b32.xlu1 %v433_v37, %s1090_s4 }
0x10fc   :  { %v751_v8 = vpop.permute.xlu0 %750 }
0x10ff   :  { %742 = vrot.lane.b32.xlu1 %v287_v39, %s1090_s4 }
0x1104   :  { %v745_v49 = vpop.permute.xlu0 %744 }
0x1161   :  { %v710_v42 = vpop.permute.xlu1 %709 }
0x1162   :  { %v712_v43 = vadd.f32 %v710_v42, %v702_v41 }
0x1164   :  { %1005 = vtanh.f32 %v712_v43 }
0x1169   :  { %v747_v18 = vpop.permute.xlu1 %746 }
0x116a   :  { %v1006_v20 = vpop.eup %1005  ;;  %914 = vmatmul.msk.f32.vlgmr.msra.gmra.mxu3 %vm68_vm0, %v747_v18 }
0x116b   :  { %715 = vrot.lane.b32.xlu2 %v1006_v20, %s1089_s21  ;;  %s1092_s21 = smov [#allocation7]  }
0x1171   :  { %v743_v10 = vpop.permute.xlu1 %742 }
0x1172   :  { %912 = vmatmul.msk.f32.gmra.mxu2 %vm68_vm0, %v743_v10 }
0x1173   :  { %748 = vrot.lane.b32.xlu2 %v506_v47, %s1090_s4 }
0x117a   :  { %913 = vmatmul.msk.f32.gmra.mxu2 %vm68_vm0, %v745_v49 }
0x117b   :  { %752 = vrot.lane.b32.xlu2 %v652_v50, %s1090_s4 }
0x11c5   :  { %v716_v51 = vpop.permute.xlu2 %715 }
0x11c6   :  { %v718_v52 = vmul.f32 %v716_v51, %v699_v35 }
0x11c8   :  { %v726_v53 = vsel %vm724_vm12, %v718_v52, %v1389_v6  ;;  %v725_v55 = vsel %vm724_vm12, %v718_v52, 0.0 }
0x11c9   :  { %828 = vrot.lane.b32.xlu2 %v726_v53, %s1090_s4  ;;  %754 = vrot.lane.b32.xlu1 %v725_v55, %s1090_s4  ;;  %s871_s4 = sshll.u32 %s1092_s21, 4  ;;  %s872_s4 = int_to_ptr.vmem [resolvable:$true] %s871_s4 }
0x11cd   :  { %v749_v54 = vpop.permute.xlu2 %748 }
0x11ce   :  { %915 = vmatmul.msk.f32.gmra.mxu3 %vm68_vm0, %v749_v54 }
0x11d5   :  { %v753_v56 = vpop.permute.xlu2 %752 }
0x11d6   :  { %916 = vmatmul.msk.f32.gmra.mxu3 %vm68_vm0, %v751_v8 }
0x11de   :  { %917 = vmatmul.msk.f32.gmra.mxu3 %vm68_vm0, %v753_v56 }
0x11ed   :  { %v796_v61 = vpop.f32.mrf.mxu3 }
0x11ee   :  { %v797_v62 = vadd.f32 %v1413_v21, %v796_v61 }
0x11f0   :  { %814 = vst [vmem:[#allocation6 + $0x18] sm:$0xff] %v797_v62 }
0x11f5   :  { %v790_v63 = vpop.f32.mrf.mxu2 }
0x11f6   :  { %v791_v0 = vadd.f32 %v1413_v21, %v790_v63 }
0x11f8   :  { %812 = vst [vmem:[#allocation6 + $0x8] sm:$0xff] %v791_v0 }
0x11fd   :  { %v793_v1 = vpop.f32.mrf.mxu2 }
0x11fe   :  { %v794_v2 = vadd.f32 %v1413_v21, %v793_v1 }
0x1200   :  { %813 = vst [vmem:[#allocation6 + $0x10] sm:$0xff] %v794_v2 }
0x1223   :  { %v829_v3 = vpop.permute.xlu2 %828 }
0x1224   :  { %919 = vmatmul.msk.f32.vlgmr.msra.gmra.mxu1 %vm68_vm0, %v829_v3 }
0x123b   :  { %v755_v4 = vpop.permute.xlu1 %754 }
0x123c   :  { %918 = vmatmul.msk.f32.gmra.mxu3 %vm68_vm0, %v755_v4 }
0x1251   :  { %v799_v5 = vpop.f32.mrf.mxu3 }
0x1252   :  { %v800_v6 = vadd.f32 %v1413_v21, %v799_v5 }
0x1254   :  { %815 = vst [vmem:[#allocation6 + $0x20] sm:$0xff] %v800_v6 }
0x1259   :  { %v802_v7 = vpop.f32.mrf.mxu3 }
0x125a   :  { %v803_v9 = vadd.f32 %v1413_v21, %v802_v7 }
0x125c   :  { %816 = vst [vmem:[#allocation6 + $0x28] sm:$0xff] %v803_v9 }
0x1261   :  { %v805_v12 = vpop.f32.mrf.mxu3 }
0x1262   :  { %v806_v14 = vadd.f32 %v1413_v21, %v805_v12 }
0x1264   :  { %817 = vst [vmem:[#allocation6 + $0x30] sm:$0xff] %v806_v14 }
0x12a1   :  { %v849_v16 = vpop.f32.mrf.mxu1 }
0x12a2   :  { %v850_v17 = vadd.f32 %v942_v15, %v849_v16 }
0x12a4   :  { %852 = vst [vmem:[#allocation7] sm:$0xff] %v850_v17 }
0x12a5   :  { %876 = dma.vmem_to_hbm [thread:$0]  %s872_s4, 128, %s874_s0, [#allocation8]  }
0x12bf   :  { %v808_v19 = vpop.f32.mrf.mxu3 }
0x12c0   :  { %v809_v22 = vadd.f32 %v1413_v21, %v808_v19 }
0x12c2   :  { %818 = vst [vmem:[#allocation6 + $0x38] sm:$0xff] %v809_v22 }
0x12c3   :  { %865 = dma.vmem_to_hbm [thread:$0]  %s858_s26, 1024, %s860_s29, [#allocation5], %s1086_s18, %s1086_s18, %s1087_s19  }
0x12c4   :  { %1081 = dma.done.wait [#allocation5], 1024  }
0x12c5   :  { %1082 = vsyncadd [#allocation5], 4294966272 }
0x12c6   :  { %1083 = dma.done.wait [#allocation8], 128  }
0x12c7   :  { %1084 = vsyncadd [#allocation8], 4294967168 }
0x12c8   :  { %885 = vsyncpa [#allocation4], 1 }
0x12c9   :  { %886 = vsyncpa [#allocation5], 1 }
0x12ca   :  { %887 = vsyncpa [#allocation8], 1 }

</bundles_post_ra>
